<compile_context>
chip_gen: v7x
topology: tpu7x:2x2x1
jax: 0.10.0
libtpu: 0.0.40
codegen_flags: <defaults>
</compile_context>

<pallas_src>
import random

import jax
import jax.numpy as jnp
from jax.experimental import pallas as pl
from jax.experimental.pallas import tpu as pltpu

MAX_MIDDLE = 3  # random.randint(0, 3) upper bound in the PyTorch module.


def _fused_dynamic_net_kernel(nmid_ref, x_ref, w_in_ref, b_in_ref,
                              w_mid_ref, b_mid_ref, w_out_ref, b_out_ref,
                              o_ref):
    """Entire DyanmicNet forward for one (TILE_N, D_in) row tile.

    nmid_ref:  (1,)            int32, SMEM (scalar prefetch) — dynamic depth 0..3
    x_ref:     (TILE_N, D_in)  f32
    w_in_ref:  (D_in, H)       bf16   (pre-transposed (out,in)->(in,out))
    b_in_ref:  (1, H)          f32
    w_mid_ref: (H, H)          bf16
    b_mid_ref: (1, H)          f32
    w_out_ref: (H, D_out)      bf16
    b_out_ref: (1, D_out)      f32
    o_ref:     (TILE_N, D_out) f32
    """
    nmid = nmid_ref[0]

    # Input layer + clamp(min=0). bf16 dot inputs, f32 accumulation & elementwise.
    h = jnp.dot(x_ref[...].astype(jnp.bfloat16), w_in_ref[...],
                preferred_element_type=jnp.float32)
    h = jnp.maximum(h + b_in_ref[...], 0.0)

    # Middle layers: statically unrolled (3 matmuls back-to-back for the LLO
    # scheduler), each step kept only when i < nmid. Shared weights loaded once.
    w_mid = w_mid_ref[...]
    b_mid = b_mid_ref[...]
    for i in range(MAX_MIDDLE):
        y = jnp.dot(h.astype(jnp.bfloat16), w_mid,
                    preferred_element_type=jnp.float32)
        y = jnp.maximum(y + b_mid, 0.0)          # post-ReLU value is what gets selected
        h = jnp.where(i < nmid, y, h)

    # Output layer (no ReLU); direct (TILE_N, D_out) store — no wrapper slice needed.
    y = jnp.dot(h.astype(jnp.bfloat16), w_out_ref[...],
                preferred_element_type=jnp.float32)
    o_ref[...] = (y + b_out_ref[...]).astype(o_ref.dtype)


def _fused_forward_call(nmid, x, w_in, b_in, w_mid, b_mid, w_out, b_out, *, tile_n):
    n, d_in = x.shape
    hdim = w_in.shape[1]
    d_out = w_out.shape[1]

    grid_spec = pltpu.PrefetchScalarGridSpec(
        num_scalar_prefetch=1,                 # nmid -> SMEM, passed to index_maps
        grid=(n // tile_n,),
        in_specs=[
            pl.BlockSpec((tile_n, d_in), lambda i, nmid: (i, 0)),   # x row tile
            pl.BlockSpec((d_in, hdim),   lambda i, nmid: (0, 0)),   # w_in  (resident)
            pl.BlockSpec((1, hdim),      lambda i, nmid: (0, 0)),   # b_in  (resident)
            pl.BlockSpec((hdim, hdim),   lambda i, nmid: (0, 0)),   # w_mid (resident)
            pl.BlockSpec((1, hdim),      lambda i, nmid: (0, 0)),   # b_mid (resident)
            pl.BlockSpec((hdim, d_out),  lambda i, nmid: (0, 0)),   # w_out (resident)
            pl.BlockSpec((1, d_out),     lambda i, nmid: (0, 0)),   # b_out (resident)
        ],
        out_specs=pl.BlockSpec((tile_n, d_out), lambda i, nmid: (i, 0)),
    )
    return pl.pallas_call(
        _fused_dynamic_net_kernel,
        out_shape=jax.ShapeDtypeStruct((n, d_out), jnp.float32),
        grid_spec=grid_spec,
        compiler_params=pltpu.CompilerParams(
            dimension_semantics=("parallel",)),  # row tiles split across TensorCores
    )(nmid, x, w_in, b_in, w_mid, b_mid, w_out, b_out)


def init_params(key, d_in, h, d_out):
    """nn.Linear-style init (PyTorch layout) + kernel-ready transposed bf16 copies."""
    ks = jax.random.split(key, 6)

    def lin(kw, kb, fan_in, fan_out):
        bound = 1.0 / jnp.sqrt(jnp.float32(fan_in))
        w = jax.random.uniform(kw, (fan_out, fan_in), jnp.float32, -bound, bound)
        b = jax.random.uniform(kb, (fan_out,), jnp.float32, -bound, bound)
        return w, b

    w_in, b_in = lin(ks[0], ks[1], d_in, h)
    w_mid, b_mid = lin(ks[2], ks[3], h, h)
    w_out, b_out = lin(ks[4], ks[5], h, d_out)

    # One-time transpose (out,in)->(in,out); weights bf16, biases kept f32.
    kernel_params = (
        (w_in.T.astype(jnp.bfloat16), b_in.reshape(1, h)),
        (w_mid.T.astype(jnp.bfloat16), b_mid.reshape(1, h)),
        (w_out.T.astype(jnp.bfloat16), b_out.reshape(1, d_out)),
    )
    torch_layout_params = ((w_in, b_in), (w_mid, b_mid), (w_out, b_out))
    return kernel_params, torch_layout_params


def make_forward(kernel_params, *, tile_n=128):
    """Returns a jitted forward(x, num_middle) with all weights closed over."""
    (w_in, b_in), (w_mid, b_mid), (w_out, b_out) = kernel_params

    @jax.jit
    def forward(x, num_middle):
        # num_middle: (1,) int32 device array -> one compile covers depths 0..3.
        n = x.shape[0]
        n_pad = ((n + tile_n - 1) // tile_n) * tile_n
        xp = x if n_pad == n else jnp.pad(x, ((0, n_pad - n), (0, 0)))
        y = _fused_forward_call(num_middle.astype(jnp.int32), xp,
                                w_in, b_in, w_mid, b_mid, w_out, b_out,
                                tile_n=tile_n)
        return y if n_pad == n else y[:n]

    return forward


def _reference(x, torch_params, num_middle):
    (w_in, b_in), (w_mid, b_mid), (w_out, b_out) = torch_params
    h = jnp.maximum(x @ w_in.T + b_in, 0.0)
    for _ in range(num_middle):
        h = jnp.maximum(h @ w_mid.T + b_mid, 0.0)
    return h @ w_out.T + b_out


if __name__ == "__main__":
    # Batch widened so each matmul fills the MXU rows; 2 row tiles -> both v7x cores.
    N, D_in, H, D_out = 256, 64, 128, 32

    key = jax.random.PRNGKey(0)
    k_x, k_p = jax.random.split(key)
    x = jax.random.normal(k_x, (N, D_in), dtype=jnp.float32)
    kernel_params, torch_params = init_params(k_p, D_in, H, D_out)

    forward = make_forward(kernel_params, tile_n=128)

    # Dynamic depth drawn on the host each forward (same semantics as the PyTorch
    # module); the value is a scalar-prefetch SMEM int, so no retracing per depth.
    random.seed(0)
    num_middle = random.randint(0, MAX_MIDDLE)

    y = forward(x, jnp.array([num_middle], dtype=jnp.int32))
    y = jax.block_until_ready(y)
    assert y.shape == (N, D_out)

    # Verify every possible depth (0..3) against a pure-f32 JAX reference. Tolerance
    # is loosened for the bf16 weight/activation cast (f32 accumulation is kept).
    for depth in range(MAX_MIDDLE + 1):
        y_d = jax.block_until_ready(forward(x, jnp.array([depth], dtype=jnp.int32)))
        ref = _reference(x, torch_params, depth)
        assert jnp.allclose(y_d, ref, atol=1e-1, rtol=5e-2), f"mismatch at depth={depth}"

    print("KERNEL_OK")
</pallas_src>

<mosaic_0001>
module attributes {stable_mosaic.version = 11 : i64} {
  func.func @_fused_dynamic_net_kernel(%arg0: i32, %arg1: memref<1xi32, #tpu.memory_space<smem>>, %arg2: memref<128x64xf32, #tpu.memory_space<vmem>>, %arg3: memref<64x128xbf16, #tpu.memory_space<vmem>>, %arg4: memref<1x128xf32, #tpu.memory_space<vmem>>, %arg5: memref<128x128xbf16, #tpu.memory_space<vmem>>, %arg6: memref<1x128xf32, #tpu.memory_space<vmem>>, %arg7: memref<128x32xbf16, #tpu.memory_space<vmem>>, %arg8: memref<1x32xf32, #tpu.memory_space<vmem>>, %arg9: memref<128x32xf32, #tpu.memory_space<vmem>>) attributes {dimension_semantics = [#tpu.dimension_semantics<parallel>], iteration_bounds = array<i64: 2>, scalar_prefetch = 1 : i64, scratch_operands = 0 : i64, tpu.core_type = #tpu.core_type<tc>, window_params = [{transform_indices = @transform_0, window_bounds = array<i64: 128, 64>}, {pipeline_mode = #tpu.pipeline_mode<synchronous>, transform_indices = @transform_1, window_bounds = array<i64: 64, 128>}, {pipeline_mode = #tpu.pipeline_mode<synchronous>, transform_indices = @transform_2, window_bounds = array<i64: 1, 128>}, {pipeline_mode = #tpu.pipeline_mode<synchronous>, transform_indices = @transform_3, window_bounds = array<i64: 128, 128>}, {pipeline_mode = #tpu.pipeline_mode<synchronous>, transform_indices = @transform_4, window_bounds = array<i64: 1, 128>}, {pipeline_mode = #tpu.pipeline_mode<synchronous>, transform_indices = @transform_5, window_bounds = array<i64: 128, 32>}, {pipeline_mode = #tpu.pipeline_mode<synchronous>, transform_indices = @transform_6, window_bounds = array<i64: 1, 32>}, {transform_indices = @transform_7, window_bounds = array<i64: 128, 32>}]} {
    %c0 = arith.constant 0 : index
    %0 = memref.load %arg1[%c0] : memref<1xi32, #tpu.memory_space<smem>>
    %c0_0 = arith.constant 0 : index
    %c0_1 = arith.constant 0 : index
    %1 = vector.load %arg2[%c0_0, %c0_1] : memref<128x64xf32, #tpu.memory_space<vmem>>, vector<128x64xf32>
    %2 = arith.truncf %1 : vector<128x64xf32> to vector<128x64xbf16>
    %c0_2 = arith.constant 0 : index
    %c0_3 = arith.constant 0 : index
    %3 = vector.load %arg3[%c0_2, %c0_3] : memref<64x128xbf16, #tpu.memory_space<vmem>>, vector<64x128xbf16>
    %cst = arith.constant dense<0.000000e+00> : vector<128x128xf32>
    %4 = tpu.matmul %2, %3, %cst {dimension_numbers = #tpu.dot_dimension_numbers<[1], [0], [0], [1], [0, 0, 1, 1], [], []>} : vector<128x64xbf16>, vector<64x128xbf16>, vector<128x128xf32> -> vector<128x128xf32>
    %c0_4 = arith.constant 0 : index
    %c0_5 = arith.constant 0 : index
    %5 = vector.load %arg4[%c0_4, %c0_5] : memref<1x128xf32, #tpu.memory_space<vmem>>, vector<1x128xf32>
    %6 = vector.broadcast %5 : vector<1x128xf32> to vector<128x128xf32>
    %7 = arith.addf %4, %6 : vector<128x128xf32>
    %cst_6 = arith.constant 0.000000e+00 : f32
    %8 = vector.broadcast %cst_6 : f32 to vector<128x128xf32>
    %9 = arith.maximumf %7, %8 : vector<128x128xf32>
    %c0_7 = arith.constant 0 : index
    %c0_8 = arith.constant 0 : index
    %10 = vector.load %arg5[%c0_7, %c0_8] : memref<128x128xbf16, #tpu.memory_space<vmem>>, vector<128x128xbf16>
    %c0_9 = arith.constant 0 : index
    %c0_10 = arith.constant 0 : index
    %11 = vector.load %arg6[%c0_9, %c0_10] : memref<1x128xf32, #tpu.memory_space<vmem>>, vector<1x128xf32>
    %12 = arith.truncf %9 : vector<128x128xf32> to vector<128x128xbf16>
    %cst_11 = arith.constant dense<0.000000e+00> : vector<128x128xf32>
    %13 = tpu.matmul %12, %10, %cst_11 {dimension_numbers = #tpu.dot_dimension_numbers<[1], [0], [0], [1], [0, 0, 1, 1], [], []>} : vector<128x128xbf16>, vector<128x128xbf16>, vector<128x128xf32> -> vector<128x128xf32>
    %14 = vector.broadcast %11 : vector<1x128xf32> to vector<128x128xf32>
    %15 = arith.addf %13, %14 : vector<128x128xf32>
    %cst_12 = arith.constant 0.000000e+00 : f32
    %16 = vector.broadcast %cst_12 : f32 to vector<128x128xf32>
    %17 = arith.maximumf %15, %16 : vector<128x128xf32>
    %c0_i32 = arith.constant 0 : i32
    %18 = arith.cmpi sgt, %0, %c0_i32 : i32
    %19 = arith.select %18, %17, %9 : vector<128x128xf32>
    %20 = arith.truncf %19 : vector<128x128xf32> to vector<128x128xbf16>
    %cst_13 = arith.constant dense<0.000000e+00> : vector<128x128xf32>
    %21 = tpu.matmul %20, %10, %cst_13 {dimension_numbers = #tpu.dot_dimension_numbers<[1], [0], [0], [1], [0, 0, 1, 1], [], []>} : vector<128x128xbf16>, vector<128x128xbf16>, vector<128x128xf32> -> vector<128x128xf32>
    %22 = vector.broadcast %11 : vector<1x128xf32> to vector<128x128xf32>
    %23 = arith.addf %21, %22 : vector<128x128xf32>
    %cst_14 = arith.constant 0.000000e+00 : f32
    %24 = vector.broadcast %cst_14 : f32 to vector<128x128xf32>
    %25 = arith.maximumf %23, %24 : vector<128x128xf32>
    %c1_i32 = arith.constant 1 : i32
    %26 = arith.cmpi sgt, %0, %c1_i32 : i32
    %27 = arith.select %26, %25, %19 : vector<128x128xf32>
    %28 = arith.truncf %27 : vector<128x128xf32> to vector<128x128xbf16>
    %cst_15 = arith.constant dense<0.000000e+00> : vector<128x128xf32>
    %29 = tpu.matmul %28, %10, %cst_15 {dimension_numbers = #tpu.dot_dimension_numbers<[1], [0], [0], [1], [0, 0, 1, 1], [], []>} : vector<128x128xbf16>, vector<128x128xbf16>, vector<128x128xf32> -> vector<128x128xf32>
    %30 = vector.broadcast %11 : vector<1x128xf32> to vector<128x128xf32>
    %31 = arith.addf %29, %30 : vector<128x128xf32>
    %cst_16 = arith.constant 0.000000e+00 : f32
    %32 = vector.broadcast %cst_16 : f32 to vector<128x128xf32>
    %33 = arith.maximumf %31, %32 : vector<128x128xf32>
    %c2_i32 = arith.constant 2 : i32
    %34 = arith.cmpi sgt, %0, %c2_i32 : i32
    %35 = arith.select %34, %33, %27 : vector<128x128xf32>
    %36 = arith.truncf %35 : vector<128x128xf32> to vector<128x128xbf16>
    %c0_17 = arith.constant 0 : index
    %c0_18 = arith.constant 0 : index
    %37 = vector.load %arg7[%c0_17, %c0_18] : memref<128x32xbf16, #tpu.memory_space<vmem>>, vector<128x32xbf16>
    %cst_19 = arith.constant dense<0.000000e+00> : vector<128x32xf32>
    %38 = tpu.matmul %36, %37, %cst_19 {dimension_numbers = #tpu.dot_dimension_numbers<[1], [0], [0], [1], [0, 0, 1, 1], [], []>} : vector<128x128xbf16>, vector<128x32xbf16>, vector<128x32xf32> -> vector<128x32xf32>
    %c0_20 = arith.constant 0 : index
    %c0_21 = arith.constant 0 : index
    %39 = vector.load %arg8[%c0_20, %c0_21] : memref<1x32xf32, #tpu.memory_space<vmem>>, vector<1x32xf32>
    %40 = vector.broadcast %39 : vector<1x32xf32> to vector<128x32xf32>
    %41 = arith.addf %38, %40 : vector<128x32xf32>
    %c0_22 = arith.constant 0 : index
    %c0_23 = arith.constant 0 : index
    %42 = vector.load %arg9[%c0_22, %c0_23] : memref<128x32xf32, #tpu.memory_space<vmem>>, vector<128x32xf32>
    tpu.vector_store %arg9[%c0_22, %c0_23], %41 {strides = array<i32>} : memref<128x32xf32, #tpu.memory_space<vmem>>, vector<128x32xf32>,
    return
  }
  func.func @transform_0(%arg0: i32, %arg1: memref<1xi32, #tpu.memory_space<smem>>) -> (i32, i32) {
    %c0_i32 = arith.constant 0 : i32
    %c0_i32_0 = arith.constant 0 : i32
    return %arg0, %c0_i32 : i32, i32
  }
  func.func @transform_1(%arg0: i32, %arg1: memref<1xi32, #tpu.memory_space<smem>>) -> (i32, i32) {
    %c0_i32 = arith.constant 0 : i32
    %c0_i32_0 = arith.constant 0 : i32
    %c0_i32_1 = arith.constant 0 : i32
    return %c0_i32, %c0_i32_0 : i32, i32
  }
  func.func @transform_2(%arg0: i32, %arg1: memref<1xi32, #tpu.memory_space<smem>>) -> (i32, i32) {
    %c0_i32 = arith.constant 0 : i32
    %c0_i32_0 = arith.constant 0 : i32
    %c0_i32_1 = arith.constant 0 : i32
    return %c0_i32, %c0_i32_0 : i32, i32
  }
  func.func @transform_3(%arg0: i32, %arg1: memref<1xi32, #tpu.memory_space<smem>>) -> (i32, i32) {
    %c0_i32 = arith.constant 0 : i32
    %c0_i32_0 = arith.constant 0 : i32
    %c0_i32_1 = arith.constant 0 : i32
    return %c0_i32, %c0_i32_0 : i32, i32
  }
  func.func @transform_4(%arg0: i32, %arg1: memref<1xi32, #tpu.memory_space<smem>>) -> (i32, i32) {
    %c0_i32 = arith.constant 0 : i32
    %c0_i32_0 = arith.constant 0 : i32
    %c0_i32_1 = arith.constant 0 : i32
    return %c0_i32, %c0_i32_0 : i32, i32
  }
  func.func @transform_5(%arg0: i32, %arg1: memref<1xi32, #tpu.memory_space<smem>>) -> (i32, i32) {
    %c0_i32 = arith.constant 0 : i32
    %c0_i32_0 = arith.constant 0 : i32
    %c0_i32_1 = arith.constant 0 : i32
    return %c0_i32, %c0_i32_0 : i32, i32
  }
  func.func @transform_6(%arg0: i32, %arg1: memref<1xi32, #tpu.memory_space<smem>>) -> (i32, i32) {
    %c0_i32 = arith.constant 0 : i32
    %c0_i32_0 = arith.constant 0 : i32
    %c0_i32_1 = arith.constant 0 : i32
    return %c0_i32, %c0_i32_0 : i32, i32
  }
  func.func @transform_7(%arg0: i32, %arg1: memref<1xi32, #tpu.memory_space<smem>>) -> (i32, i32) {
    %c0_i32 = arith.constant 0 : i32
    %c0_i32_0 = arith.constant 0 : i32
    return %arg0, %c0_i32 : i32, i32
  }
}

</mosaic_0001>

<bundles_post_ra>
// kernel: forward.1
= control target key start
LH: loop header
LB: loop body
LE: loop exit
PB: predicated region body
PF: predicated region fallthrough
CT: control target
= control target key end

     0   :  { %s1600_s29 = smov 0   ;;  %s2256_s0 = inlined_call_operand.<no memory space> [shape: s32[1], index: 0, kind: input, shape index: {}]   ;;  %s2257_s1 = inlined_call_operand.vmem [shape: f32[256,64], index: 1, kind: input, shape index: {}]   ;;  %s2258_s2 = inlined_call_operand.vmem [shape: bf16[64,128], index: 2, kind: input, shape index: {}]   ;;  %s2259_s3 = inlined_call_operand.vmem [shape: f32[1,128], index: 3, kind: input, shape index: {}]   ;;  %s2260_s4 = inlined_call_operand.vmem [shape: bf16[128,128], index: 4, kind: input, shape index: {}]   ;;  %s2261_s5 = inlined_call_operand.vmem [shape: f32[1,128], index: 5, kind: input, shape index: {}]   ;;  %s2262_s6 = inlined_call_operand.vmem [shape: bf16[128,32], index: 6, kind: input, shape index: {}]   ;;  %s2263_s7 = inlined_call_operand.vmem [shape: f32[1,32], index: 7, kind: input, shape index: {}]   ;;  %s2264_s8 = inlined_call_operand.vmem [shape: f32[256,32], index: 8, kind: output, shape index: {}]  }
   0x1   :  { %13 = sst [smem:[#allocation3]] %s2256_s0 }
   0x2 LB: > { %s1230_s30 = sadd.s32 4294967295, %s1550_s29   ;;  %p1234_p0 = scmp.ge.s32.totalorder %s1550_s29, 1  ;;  %s1550_s29 = sphi %s1600_s29, %s19_s29  }
   0x3   : > { %p240_p1 = scmp.lt.s32.totalorder %s1550_s29, 3 }
   0x5   : > { %p241_p2 = pnand %p1234_p0, %p240_p1 }
   0x6   : > { %v1524_v0 = vld [vmem:[%s2258_s2] sm:$0xff] (!%p241_p2)   ;;  %s1235_s0 = sshll.u32 (!%p241_p2), %s1230_s30, 4  ;;  %v1525_v1 = vld [vmem:[%s2258_s2 + $0x8] sm:$0xff] (!%p241_p2)   ;;  %v1526_v2 = vld [vmem:[%s2258_s2 + $0x10] sm:$0xff] (!%p241_p2)   ;;  %vm349_vm0 = vcmask (!%p241_p2), 523264   ;;  %s1843_s19 = sld [smem:[#allocation3]] (!%p241_p2) }
   0x7   : > { %244 = sbr.rel (%p241_p2) target bundleno = 1156 (0x484), region = 48  ;;  %p273_p3 = scmp.lt.s32.totalorder (!%p241_p2), %s1235_s0, 31  ;;  %1348 = vmatprep.subr.bf16.mxu0 (!%p241_p2), %v1524_v0  ;;  %v1622_v3 = vld [vmem:[%s2260_s4] sm:$0xff] (!%p241_p2)   ;;  %v1628_v4 = vld [vmem:[%s2260_s4 + $0x8] sm:$0xff] (!%p241_p2)   ;;  %v1527_v7 = vld [vmem:[%s2258_s2 + $0x18] sm:$0xff] (!%p241_p2)   ;;  %vm1157_vm4 = vcmask (!%p241_p2), 261120  }
   0x8   : > { %1349 = vmatpush3.bf16.msra.mxu0 (!%p241_p2), %v1524_v0  ;;  %1372 = vmatprep.subr.bf16.mxu1 (!%p241_p2), %v1622_v3  ;;  %v1648_v9 = vld [vmem:[%s2260_s4 + $0x10] sm:$0xff] (!%p241_p2)   ;;  %v1660_v14 = vld [vmem:[%s2260_s4 + $0x18] sm:$0xff] (!%p241_p2)   ;;  %v1666_v17 = vld [vmem:[%s2260_s4 + $0x20] sm:$0xff] (!%p241_p2)  }
   0x9   : > { %1350 = vmatprep.subr.bf16.mxu0 (!%p241_p2), %v1525_v1  ;;  %1373 = vmatpush3.bf16.msra.mxu1 (!%p241_p2), %v1622_v3  ;;  %v1678_v22 = vld [vmem:[%s2260_s4 + $0x28] sm:$0xff] (!%p241_p2)   ;;  %v1711_v34 = vld [vmem:[%s2260_s4 + $0x30] sm:$0xff] (!%p241_p2)   ;;  %v1720_v35 = vld [vmem:[%s2260_s4 + $0x38] sm:$0xff] (!%p241_p2)  }
   0xa   : > { %1374 = vmatprep.subr.bf16.mxu1 (!%p241_p2), %v1628_v4  ;;  %v1730_v36 = vld [vmem:[%s2259_s3] ss:$0 sm:$0xff] (!%p241_p2) }
   0xc   : > { %1351 = vmatpush3.bf16.msra.mxu0 (!%p241_p2), %v1525_v1  ;;  %p679_p4 = scmp.gt.s32.totalorder (!%p241_p2), %s1843_s19, 0  ;;  %p820_p5 = scmp.gt.s32.totalorder (!%p241_p2), %s1843_s19, 1 }
   0xd   : > { %1352 = vmatprep.subr.bf16.mxu0 (!%p241_p2), %v1526_v2  ;;  %1375 = vmatpush3.bf16.msra.mxu1 (!%p241_p2), %v1628_v4  ;;  %p961_p6 = scmp.gt.s32.totalorder (!%p241_p2), %s1843_s19, 2 }
   0xe   : > { %s2272_s0 = smov (!%p273_p3, %s1235_s0), 31  ;;  %1376 = vmatprep.subr.bf16.mxu1 %v1648_v9 }
   0xf   : > { %s1236_s17 = sshll.u32 %s2272_s0, 3 }
  0x10   : > { %s1635_s22 = scalar_lea.vmem %s2257_s1, %s1236_s17  ;;  %1353 = vmatpush3.bf16.msra.mxu0 %v1526_v2  ;;  %s2219_s25 = scalar_lea.vmem %s2264_s8, %s1236_s17 }
  0x11   : > { %v286_v5 = vld [vmem:[%s1635_s22] sm:$0xff]  ;;  %v287_v6 = vld [vmem:[%s1635_s22 + $0x8] sm:$0xff]  ;;  %v288_v10 = vld [vmem:[%s1635_s22 + $0x10] sm:$0xff]  ;;  %1354 = vmatprep.subr.bf16.mxu0 %v1527_v7  ;;  %1377 = vmatpush3.bf16.msra.mxu1 %v1648_v9  ;;  %s821_s12 = scalar_select %p820_p5, 1, 0 }
  0x12   : > { %v302_v8 = vpack.c.bf16 %v287_v6, %v286_v5  ;;  %v289_v11 = vld [vmem:[%s1635_s22 + $0x18] sm:$0xff]  ;;  %v290_v12 = vld [vmem:[%s1635_s22 + $0x20] sm:$0xff]  ;;  %v291_v13 = vld [vmem:[%s1635_s22 + $0x28] sm:$0xff]  ;;  %1378 = vmatprep.subr.bf16.mxu1 %v1660_v14  ;;  %s962_s21 = scalar_select %p961_p6, 1, 0 }
  0x13   : > { %v303_v15 = vpack.c.bf16 %v289_v11, %v288_v10  ;;  %v304_v16 = vpack.c.bf16 %v291_v13, %v290_v12  ;;  %v292_v18 = vld [vmem:[%s1635_s22 + $0x30] sm:$0xff]  ;;  %v293_v19 = vld [vmem:[%s1635_s22 + $0x38] sm:$0xff]  ;;  %v294_v20 = vld [vmem:[%s1635_s22 + $0x40] sm:$0xff] }
  0x14   : > { %1356 = vmatprep.mubr.msk.bf16.mxu0 %vm349_vm0, %v302_v8  ;;  %1355 = vmatpush3.bf16.msra.mxu0 %v1527_v7  ;;  %v295_v21 = vld [vmem:[%s1635_s22 + $0x48] sm:$0xff]  ;;  %v305_v23 = vpack.c.bf16 %v293_v19, %v292_v18  ;;  %v296_v25 = vld [vmem:[%s1635_s22 + $0x50] sm:$0xff]  ;;  %v297_v26 = vld [vmem:[%s1635_s22 + $0x58] sm:$0xff] }
  0x15   : > { %1404 = vmatprep.subr.bf16.mxu0 %v1622_v3  ;;  %1379 = vmatpush3.bf16.msra.mxu1 %v1660_v14  ;;  %v306_v24 = vpack.c.bf16 %v295_v21, %v294_v20  ;;  %v298_v27 = vld [vmem:[%s1635_s22 + $0x60] sm:$0xff]  ;;  %v299_v28 = vld [vmem:[%s1635_s22 + $0x68] sm:$0xff]  ;;  %v307_v29 = vpack.c.bf16 %v297_v26, %v296_v25  ;;  %v300_v31 = vld [vmem:[%s1635_s22 + $0x70] sm:$0xff] }
  0x16   : > { %1380 = vmatprep.subr.bf16.mxu1 %v1666_v17  ;;  %v308_v30 = vpack.c.bf16 %v299_v28, %v298_v27  ;;  %v301_v32 = vld [vmem:[%s1635_s22 + $0x78] sm:$0xff]  ;;  %s680_s22 = scalar_select %p679_p4, 1, 0 }
  0x17   : > { %1357 = vmatmul.mubr.msk.bf16.vlgmr.msra.gmra.mrb[0].mxu0 %vm349_vm0, %v303_v15  ;;  %v309_v33 = vpack.c.bf16 %v301_v32, %v300_v31 }
  0x18   : > { %1360 = vmatprep.mubr.msk.bf16.mxu0 %vm349_vm0, %v304_v16  ;;  %1405 = vmatpush3.bf16.msra.mxu0 %v1622_v3 }
  0x19   : > { %1406 = vmatprep.subr.bf16.mxu0 %v1628_v4  ;;  %1381 = vmatpush3.bf16.msra.mxu1 %v1666_v17 }
  0x1a   : > { %1382 = vmatprep.subr.bf16.mxu1 %v1678_v22 }
  0x1c   : > { %1407 = vmatpush3.bf16.msra.mxu0 %v1628_v4 }
  0x1d   : > { %1408 = vmatprep.subr.bf16.mxu0 %v1648_v9  ;;  %1383 = vmatpush3.bf16.msra.mxu1 %v1678_v22 }
  0x1e   : > { %1384 = vmatprep.subr.bf16.mxu1 %v1711_v34 }
  0x1f   : > { %1361 = vmatmul.mubr.msk.bf16.gmra.mrb[4].mxu0 %vm349_vm0, %v305_v23 }
  0x20   : > { %1364 = vmatprep.mubr.msk.bf16.mxu0 %vm349_vm0, %v306_v24  ;;  %1409 = vmatpush3.bf16.msra.mxu0 %v1648_v9 }
  0x21   : > { %1410 = vmatprep.subr.bf16.mxu0 %v1660_v14  ;;  %1385 = vmatpush3.bf16.msra.mxu1 %v1711_v34 }
  0x22   : > { %1386 = vmatprep.subr.bf16.mxu1 %v1720_v35 }
  0x24   : > { %1411 = vmatpush3.bf16.msra.mxu0 %v1660_v14 }
  0x25   : > { %1412 = vmatprep.subr.bf16.mxu0 %v1666_v17  ;;  %1387 = vmatpush3.bf16.msra.mxu1 %v1720_v35 }
  0x26   : > { %1436 = vmatprep.subr.bf16.mxu1 %v1622_v3 }
  0x27   : > { %1365 = vmatmul.mubr.msk.bf16.gmra.mrb[8].mxu0 %vm349_vm0, %v307_v29 }
  0x28   : > { %1368 = vmatprep.mubr.msk.bf16.mxu0 %vm349_vm0, %v308_v30  ;;  %1413 = vmatpush3.bf16.msra.mxu0 %v1666_v17 }
  0x29   : > { %1414 = vmatprep.subr.bf16.mxu0 %v1678_v22 }
  0x2c   : > { %1415 = vmatpush3.bf16.msra.mxu0 %v1678_v22 }
  0x2d   : > { %1416 = vmatprep.subr.bf16.mxu0 %v1711_v34 }
  0x2f   : > { %1369 = vmatmul.mubr.msk.bf16.gmra.mrb[12].mxu0 %vm349_vm0, %v309_v33  ;;  %v681_v33 = vstv %s680_s22 }
  0x30   : > { %1417 = vmatpush3.bf16.msra.mxu0 %v1711_v34  ;;  %vm1855_vm1 = vcmp.eq.s32.totalorder %v681_v33, 1 }
  0x31   : > { %1418 = vmatprep.subr.bf16.mxu0 %v1720_v35 }
  0x34   : > { %1419 = vmatpush3.bf16.msra.mxu0 %v1720_v35 }
  0xea   : > { %v1358_v37 = vpop.f32.mrb[0].mxu0 }
  0xeb   : > { %v408_v38 = vpop.f32.mrb[1].mxu0  ;;  %v1736_v41 = vadd.f32 %v1358_v37, %v1730_v36 }
  0xec   : > { %v1733_v39 = vadd.f32 %v1730_v36, %v408_v38  ;;  %v1359_v40 = vpop.f32.mrb[2].mxu0 }
  0xed   : > { %v1739_v42 = vadd.f32 %v1359_v40, %v1730_v36  ;;  %v411_v43 = vpop.f32.mrb[3].mxu0  ;;  %v473_v48 = vmax.f32 %v1736_v41, 0.0 }
  0xee   : > { %v1742_v44 = vadd.f32 %v1730_v36, %v411_v43  ;;  %v471_v46 = vmax.f32 %v1733_v39, 0.0 }
  0xef   : > { %v474_v45 = vmax.f32 %v1739_v42, 0.0 }
  0xf0   : > { %v472_v47 = vmax.f32 %v1742_v44, 0.0 }
  0xf1   : > { %v505_v51 = vpack.c.bf16 %v474_v45, %v473_v48 }
  0xf2   : > { %v1362_v49 = vpop.f32.mrb[4].mxu0  ;;  %v504_v50 = vpack.c.bf16 %v472_v47, %v471_v46 }
  0xf3   : > { %v424_v52 = vpop.f32.mrb[5].mxu0  ;;  %v1760_v55 = vadd.f32 %v1362_v49, %v1730_v36 }
  0xf4   : > { %v1757_v53 = vadd.f32 %v1730_v36, %v424_v52  ;;  %v1363_v54 = vpop.f32.mrb[6].mxu0  ;;  %1388 = vmatprep.mubr.bf16.mxu1 %v504_v50 }
  0xf5   : > { %v1763_v56 = vadd.f32 %v1363_v54, %v1730_v36  ;;  %v427_v57 = vpop.f32.mrb[7].mxu0  ;;  %1389 = vmatmul.mubr.bf16.vlgmr.msra.gmra.mrb[0].mxu1 %v505_v51  ;;  %v477_v62 = vmax.f32 %v1760_v55, 0.0 }
  0xf6   : > { %v1766_v58 = vadd.f32 %v1730_v36, %v427_v57  ;;  %1437 = vmatpush3.bf16.msra.mxu1 %v1622_v3  ;;  %v475_v60 = vmax.f32 %v1757_v53, 0.0 }
  0xf7   : > { %v478_v59 = vmax.f32 %v1763_v56, 0.0  ;;  %1438 = vmatprep.subr.bf16.mxu1 %v1628_v4 }
  0xf8   : > { %v476_v61 = vmax.f32 %v1766_v58, 0.0 }
  0xf9   : > { %v507_v1 = vpack.c.bf16 %v478_v59, %v477_v62 }
  0xfa   : > { %v506_v63 = vpack.c.bf16 %v476_v61, %v475_v60  ;;  %v1366_v0 = vpop.f32.mrb[8].mxu0  ;;  %1439 = vmatpush3.bf16.msra.mxu1 %v1628_v4 }
  0xfb   : > { %v440_v2 = vpop.f32.mrb[9].mxu0  ;;  %1440 = vmatprep.subr.bf16.mxu1 %v1648_v9  ;;  %v1788_v6 = vadd.f32 %v1366_v0, %v1730_v36 }
  0xfc   : > { %v1785_v3 = vadd.f32 %v1730_v36, %v440_v2  ;;  %v1367_v5 = vpop.f32.mrb[10].mxu0  ;;  %1392 = vmatprep.mubr.bf16.mxu1 %v506_v63 }
  0xfd   : > { %v1791_v7 = vadd.f32 %v1367_v5, %v1730_v36  ;;  %v443_v4 = vpop.f32.mrb[11].mxu0  ;;  %1393 = vmatmul.mubr.bf16.gmra.mrb[4].mxu1 %v507_v1  ;;  %v481_v13 = vmax.f32 %v1788_v6, 0.0 }
  0xfe   : > { %v1794_v8 = vadd.f32 %v1730_v36, %v443_v4  ;;  %1441 = vmatpush3.bf16.msra.mxu1 %v1648_v9  ;;  %v479_v11 = vmax.f32 %v1785_v3, 0.0 }
  0xff   : > { %v482_v10 = vmax.f32 %v1791_v7, 0.0  ;;  %1442 = vmatprep.subr.bf16.mxu1 %v1660_v14 }
 0x100   : > { %v480_v12 = vmax.f32 %v1794_v8, 0.0 }
 0x101   : > { %v509_v9 = vpack.c.bf16 %v482_v10, %v481_v13 }
 0x102   : > { %v508_v15 = vpack.c.bf16 %v480_v12, %v479_v11  ;;  %v1370_v16 = vpop.f32.mrb[12].mxu0  ;;  %1443 = vmatpush3.bf16.msra.mxu1 %v1660_v14 }
 0x103   : > { %v456_v18 = vpop.f32.mrb[13].mxu0  ;;  %1444 = vmatprep.subr.bf16.mxu1 %v1666_v17  ;;  %v1816_v21 = vadd.f32 %v1370_v16, %v1730_v36 }
 0x104   : > { %v1813_v19 = vadd.f32 %v1730_v36, %v456_v18  ;;  %v1371_v20 = vpop.f32.mrb[14].mxu0  ;;  %1396 = vmatprep.mubr.bf16.mxu1 %v508_v15 }
 0x105   : > { %v1819_v23 = vadd.f32 %v1371_v20, %v1730_v36  ;;  %v459_v14 = vpop.f32.mrb[15].mxu0  ;;  %1397 = vmatmul.mubr.bf16.gmra.mrb[8].mxu1 %v509_v9  ;;  %v485_v28 = vmax.f32 %v1816_v21, 0.0  ;;  %v1992_v21 = vld [vmem:[%s2262_s6 + $0x10] sm:$0xff]  }
 0x106   : > { %v1822_v24 = vadd.f32 %v1730_v36, %v459_v14  ;;  %1445 = vmatpush3.bf16.msra.mxu1 %v1666_v17  ;;  %v483_v26 = vmax.f32 %v1813_v19, 0.0 }
 0x107   : > { %v486_v25 = vmax.f32 %v1819_v23, 0.0  ;;  %1446 = vmatprep.subr.bf16.mxu1 %v1678_v22 }
 0x108   : > { %v484_v27 = vmax.f32 %v1822_v24, 0.0  ;;  %v1536_v24 = vld [vmem:[%s2262_s6] sm:$0xff]  }
 0x109   : > { %v511_v17 = vpack.c.bf16 %v486_v25, %v485_v28  ;;  %1468 = vmatprep.subr.bf16.mxu0 %v1536_v24 }
 0x10a   : > { %v510_v29 = vpack.c.bf16 %v484_v27, %v483_v26  ;;  %1447 = vmatpush3.bf16.msra.mxu1 %v1678_v22  ;;  %v1849_v22 = vld [vmem:[%s2261_s5] ss:$0 sm:$0xff] }
 0x10b   : > { %1448 = vmatprep.subr.bf16.mxu1 %v1711_v34 }
 0x10c   : > { %1400 = vmatprep.mubr.bf16.mxu1 %v510_v29 }
 0x10d   : > { %1401 = vmatmul.mubr.bf16.gmra.mrb[12].mxu1 %v511_v17 }
 0x10e   : > { %1449 = vmatpush3.bf16.msra.mxu1 %v1711_v34 }
 0x10f   : > { %1450 = vmatprep.subr.bf16.mxu1 %v1720_v35 }
 0x112   : > { %1451 = vmatpush3.bf16.msra.mxu1 %v1720_v35 }
 0x113   : > { %1500 = vmatprep.subr.bf16.mxu1 %v1536_v24 }
 0x1c8   : > { %v1390_v30 = vpop.f32.mrb[0].mxu1 }
 0x1c9   : > { %v609_v31 = vadd.f32 %v1390_v30, %v1849_v22  ;;  %v600_v32 = vpop.f32.mrb[1].mxu1 }
 0x1ca   : > { %v601_v34 = vadd.f32 %v1849_v22, %v600_v32  ;;  %v1391_v36 = vpop.f32.mrb[2].mxu1 }
 0x1cb   : > { %v612_v35 = vadd.f32 %v1391_v36, %v1849_v22  ;;  %v603_v37 = vpop.f32.mrb[3].mxu1  ;;  %v665_v43 = vmax.f32 %v609_v31, 0.0 }
 0x1cc   : > { %v663_v38 = vmax.f32 %v601_v34, 0.0  ;;  %v604_v40 = vadd.f32 %v1849_v22, %v603_v37 }
 0x1cd   : > { %v666_v50 = vmax.f32 %v612_v35, 0.0  ;;  %v1881_v42 = vsel %vm1855_vm1, %v665_v43, %v473_v48 }
 0x1ce   : > { %v664_v51 = vmax.f32 %v604_v40, 0.0  ;;  %v1869_v57 = vsel %vm1855_vm1, %v663_v38, %v471_v46 }
 0x1cf   : > { %v1863_v52 = vsel %vm1855_vm1, %v666_v50, %v474_v45 }
 0x1d0   : > { %v1394_v54 = vpop.f32.mrb[4].mxu1  ;;  %v1875_v63 = vsel %vm1855_vm1, %v664_v51, %v472_v47  ;;  %v700_v46 = vpack.c.bf16 %v1863_v52, %v1881_v42 }
 0x1d1   : > { %v625_v45 = vadd.f32 %v1394_v54, %v1849_v22  ;;  %v616_v0 = vpop.f32.mrb[5].mxu1  ;;  %v699_v39 = vpack.c.bf16 %v1875_v63, %v1869_v57 }
 0x1d2   : > { %v617_v44 = vadd.f32 %v1849_v22, %v616_v0  ;;  %v1395_v1 = vpop.f32.mrb[6].mxu1 }
 0x1d3   : > { %v628_v47 = vadd.f32 %v1395_v1, %v1849_v22  ;;  %v619_v2 = vpop.f32.mrb[7].mxu1  ;;  %1420 = vmatprep.mubr.bf16.mxu0 %v699_v39  ;;  %v669_v5 = vmax.f32 %v625_v45, 0.0 }
 0x1d4   : > { %v667_v41 = vmax.f32 %v617_v44, 0.0  ;;  %v620_v48 = vadd.f32 %v1849_v22, %v619_v2  ;;  %1421 = vmatmul.mubr.bf16.vlgmr.msra.gmra.mrb[16].mxu0 %v700_v46  ;;  %v822_v44 = vstv %s821_s12 }
 0x1d5   : > { %v670_v4 = vmax.f32 %v628_v47, 0.0  ;;  %v1916_v53 = vsel %vm1855_vm1, %v669_v5, %v477_v62  ;;  %1469 = vmatpush3.bf16.msra.mxu0 %v1536_v24  ;;  %vm2015_vm2 = vcmp.eq.s32.totalorder %v822_v44, 1 }
 0x1d6   : > { %v668_v15 = vmax.f32 %v620_v48, 0.0  ;;  %v1901_v18 = vsel %vm1855_vm1, %v667_v41, %v475_v60 }
 0x1d7   : > { %v1895_v16 = vsel %vm1855_vm1, %v670_v4, %v478_v59 }
 0x1d8   : > { %v1398_v9 = vpop.f32.mrb[8].mxu1  ;;  %v1907_v20 = vsel %vm1855_vm1, %v668_v15, %v476_v61  ;;  %v702_v58 = vpack.c.bf16 %v1895_v16, %v1916_v53 }
 0x1d9   : > { %v641_v14 = vadd.f32 %v1398_v9, %v1849_v22  ;;  %v632_v56 = vpop.f32.mrb[9].mxu1  ;;  %v701_v59 = vpack.c.bf16 %v1907_v20, %v1901_v18 }
 0x1da   : > { %v633_v60 = vadd.f32 %v1849_v22, %v632_v56  ;;  %v1399_v29 = vpop.f32.mrb[10].mxu1 }
 0x1db   : > { %v644_v61 = vadd.f32 %v1399_v29, %v1849_v22  ;;  %v635_v17 = vpop.f32.mrb[11].mxu1  ;;  %1424 = vmatprep.mubr.bf16.mxu0 %v701_v59  ;;  %v673_v32 = vmax.f32 %v641_v14, 0.0 }
 0x1dc   : > { %v671_v30 = vmax.f32 %v633_v60, 0.0  ;;  %v636_v31 = vadd.f32 %v1849_v22, %v635_v17  ;;  %1425 = vmatmul.mubr.bf16.gmra.mrb[20].mxu0 %v702_v58 }
 0x1dd   : > { %v674_v55 = vmax.f32 %v644_v61, 0.0  ;;  %v1948_v3 = vsel %vm1855_vm1, %v673_v32, %v481_v13 }
 0x1de   : > { %v672_v33 = vmax.f32 %v636_v31, 0.0  ;;  %v1933_v36 = vsel %vm1855_vm1, %v671_v30, %v479_v11 }
 0x1df   : > { %v1927_v62 = vsel %vm1855_vm1, %v674_v55, %v482_v10 }
 0x1e0   : > { %v1402_v34 = vpop.f32.mrb[12].mxu1  ;;  %v1939_v35 = vsel %vm1855_vm1, %v672_v33, %v480_v12  ;;  %v704_v8 = vpack.c.bf16 %v1927_v62, %v1948_v3 }
 0x1e1   : > { %v657_v37 = vadd.f32 %v1402_v34, %v1849_v22  ;;  %v648_v7 = vpop.f32.mrb[13].mxu1  ;;  %v703_v10 = vpack.c.bf16 %v1939_v35, %v1933_v36 }
 0x1e2   : > { %v649_v11 = vadd.f32 %v1849_v22, %v648_v7  ;;  %v1403_v38 = vpop.f32.mrb[14].mxu1 }
 0x1e3   : > { %v660_v12 = vadd.f32 %v1403_v38, %v1849_v22  ;;  %v651_v40 = vpop.f32.mrb[15].mxu1  ;;  %1428 = vmatprep.mubr.bf16.mxu0 %v703_v10  ;;  %v677_v51 = vmax.f32 %v657_v37, 0.0 }
 0x1e4   : > { %v675_v43 = vmax.f32 %v649_v11, 0.0  ;;  %v652_v50 = vadd.f32 %v1849_v22, %v651_v40  ;;  %1429 = vmatmul.mubr.bf16.gmra.mrb[24].mxu0 %v704_v8 }
 0x1e5   : > { %v678_v6 = vmax.f32 %v660_v12, 0.0  ;;  %v1979_v23 = vsel %vm1855_vm1, %v677_v51, %v485_v28 }
 0x1e6   : > { %v676_v54 = vmax.f32 %v652_v50, 0.0  ;;  %v1965_v45 = vsel %vm1855_vm1, %v675_v43, %v483_v26  ;;  %v1998_v26 = vld [vmem:[%s2262_s6 + $0x18] sm:$0xff]  }
 0x1e7   : > { %v1959_v13 = vsel %vm1855_vm1, %v678_v6, %v486_v25  ;;  %v1537_v25 = vld [vmem:[%s2262_s6 + $0x8] sm:$0xff]  }
 0x1e8   : > { %v1971_v0 = vsel %vm1855_vm1, %v676_v54, %v484_v27  ;;  %v706_v19 = vpack.c.bf16 %v1959_v13, %v1979_v23  ;;  %1470 = vmatprep.subr.bf16.mxu0 %v1537_v25  ;;  %v2005_v27 = vld [vmem:[%s2262_s6 + $0x20] sm:$0xff]  }
 0x1e9   : > { %v705_v39 = vpack.c.bf16 %v1971_v0, %v1965_v45  ;;  %1471 = vmatpush3.bf16.msra.mxu0 %v1537_v25 }
 0x1ea   : > { %1472 = vmatprep.subr.bf16.mxu0 %v1992_v21 }
 0x1eb   : > { %1432 = vmatprep.mubr.bf16.mxu0 %v705_v39 }
 0x1ec   : > { %1433 = vmatmul.mubr.bf16.gmra.mrb[28].mxu0 %v706_v19 }
 0x1ed   : > { %1473 = vmatpush3.bf16.msra.mxu0 %v1992_v21 }
 0x1ee   : > { %1474 = vmatprep.subr.bf16.mxu0 %v1998_v26 }
 0x1f1   : > { %1475 = vmatpush3.bf16.msra.mxu0 %v1998_v26 }
 0x1f2   : > { %1476 = vmatprep.subr.bf16.mxu0 %v2005_v27 }
 0x1f5   : > { %1477 = vmatpush3.bf16.msra.mxu0 %v2005_v27 }
 0x2a7   : > { %v1422_v28 = vpop.f32.mrb[16].mxu0 }
 0x2a8   : > { %v750_v49 = vadd.f32 %v1422_v28, %v1849_v22  ;;  %v741_v46 = vpop.f32.mrb[17].mxu0 }
 0x2a9   : > { %v742_v1 = vadd.f32 %v1849_v22, %v741_v46  ;;  %v1423_v47 = vpop.f32.mrb[18].mxu0 }
 0x2aa   : > { %v753_v2 = vadd.f32 %v1423_v47, %v1849_v22  ;;  %v744_v41 = vpop.f32.mrb[19].mxu0  ;;  %v806_v4 = vmax.f32 %v750_v49, 0.0 }
 0x2ab   : > { %v804_v48 = vmax.f32 %v742_v1, 0.0  ;;  %v745_v5 = vadd.f32 %v1849_v22, %v744_v41 }
 0x2ac   : > { %v807_v9 = vmax.f32 %v753_v2, 0.0  ;;  %v2037_v58 = vsel %vm2015_vm2, %v806_v4, %v1881_v42 }
 0x2ad   : > { %v805_v14 = vmax.f32 %v745_v5, 0.0  ;;  %v2027_v60 = vsel %vm2015_vm2, %v804_v48, %v1869_v57 }
 0x2ae   : > { %v2022_v56 = vsel %vm2015_vm2, %v807_v9, %v1863_v52 }
 0x2af   : > { %v1426_v59 = vpop.f32.mrb[20].mxu0  ;;  %v2032_v29 = vsel %vm2015_vm2, %v805_v14, %v1875_v63  ;;  %v841_v57 = vpack.c.bf16 %v2022_v56, %v2037_v58 }
 0x2b0   : > { %v766_v61 = vadd.f32 %v1426_v59, %v1849_v22  ;;  %v757_v52 = vpop.f32.mrb[21].mxu0  ;;  %v840_v17 = vpack.c.bf16 %v2032_v29, %v2027_v60 }
 0x2b1   : > { %v758_v30 = vadd.f32 %v1849_v22, %v757_v52  ;;  %v1427_v31 = vpop.f32.mrb[22].mxu0  ;;  %v963_v52 = vstv %s962_s21 }
 0x2b2   : > { %v769_v63 = vadd.f32 %v1427_v31, %v1849_v22  ;;  %v760_v32 = vpop.f32.mrb[23].mxu0  ;;  %1452 = vmatprep.mubr.bf16.mxu1 %v840_v17  ;;  %v810_v33 = vmax.f32 %v766_v61, 0.0  ;;  %vm2146_vm3 = vcmp.eq.s32.totalorder %v963_v52, 1 }
 0x2b3   : > { %v808_v55 = vmax.f32 %v758_v30, 0.0  ;;  %v761_v42 = vadd.f32 %v1849_v22, %v760_v32  ;;  %1453 = vmatmul.mubr.bf16.vlgmr.msra.gmra.mrb[16].mxu1 %v841_v57 }
 0x2b4   : > { %v811_v34 = vmax.f32 %v769_v63, 0.0  ;;  %1508 = vmatpush3.bf16.msra.mxu1 %v1536_v24 }
 0x2b5   : > { %v809_v37 = vmax.f32 %v761_v42, 0.0  ;;  %1501 = vmatprep.subr.bf16.mxu1 %v1537_v25  ;;  %v2055_v11 = vsel %vm2015_vm2, %v808_v55, %v1901_v18 }
 0x2b6   : > { %v2050_v7 = vsel %vm2015_vm2, %v811_v34, %v1895_v16  ;;  %v2068_v16 = vsel %vm2015_vm2, %v810_v33, %v1916_v53 }
 0x2b7   : > { %v1430_v10 = vpop.f32.mrb[24].mxu0  ;;  %v2060_v38 = vsel %vm2015_vm2, %v809_v37, %v1907_v20  ;;  %v843_v50 = vpack.c.bf16 %v2050_v7, %v2068_v16 }
 0x2b8   : > { %v782_v8 = vadd.f32 %v1430_v10, %v1849_v22  ;;  %v773_v12 = vpop.f32.mrb[25].mxu0  ;;  %v842_v40 = vpack.c.bf16 %v2060_v38, %v2055_v11  ;;  %1509 = vmatpush3.bf16.msra.mxu1 %v1537_v25 }
 0x2b9   : > { %v774_v18 = vadd.f32 %v1849_v22, %v773_v12  ;;  %v1431_v43 = vpop.f32.mrb[26].mxu0  ;;  %1502 = vmatprep.subr.bf16.mxu1 %v1992_v21 }
 0x2ba   : > { %v785_v20 = vadd.f32 %v1431_v43, %v1849_v22  ;;  %v776_v51 = vpop.f32.mrb[27].mxu0  ;;  %1456 = vmatprep.mubr.bf16.mxu1 %v842_v40  ;;  %v814_v39 = vmax.f32 %v782_v8, 0.0 }
 0x2bb   : > { %v812_v6 = vmax.f32 %v774_v18, 0.0  ;;  %v777_v54 = vadd.f32 %v1849_v22, %v776_v51  ;;  %1457 = vmatmul.mubr.bf16.gmra.mrb[20].mxu1 %v843_v50 }
 0x2bc   : > { %v815_v53 = vmax.f32 %v785_v20, 0.0  ;;  %1510 = vmatpush3.bf16.msra.mxu1 %v1992_v21 }
 0x2bd   : > { %v813_v19 = vmax.f32 %v777_v54, 0.0  ;;  %1503 = vmatprep.subr.bf16.mxu1 %v1998_v26  ;;  %v2086_v28 = vsel %vm2015_vm2, %v812_v6, %v1933_v36 }
 0x2be   : > { %v2081_v24 = vsel %vm2015_vm2, %v815_v53, %v1927_v62  ;;  %v2099_v62 = vsel %vm2015_vm2, %v814_v39, %v1948_v3 }
 0x2bf   : > { %v1434_v25 = vpop.f32.mrb[28].mxu0  ;;  %v2091_v49 = vsel %vm2015_vm2, %v813_v19, %v1939_v35  ;;  %v845_v35 = vpack.c.bf16 %v2081_v24, %v2099_v62 }
 0x2c0   : > { %v798_v21 = vadd.f32 %v1434_v25, %v1849_v22  ;;  %v789_v46 = vpop.f32.mrb[29].mxu0  ;;  %v844_v44 = vpack.c.bf16 %v2091_v49, %v2086_v28  ;;  %1511 = vmatpush3.bf16.msra.mxu1 %v1998_v26 }
 0x2c1   : > { %v790_v36 = vadd.f32 %v1849_v22, %v789_v46  ;;  %v1435_v1 = vpop.f32.mrb[30].mxu0  ;;  %1504 = vmatprep.subr.bf16.mxu1 %v2005_v27 }
 0x2c2   : > { %v801_v47 = vadd.f32 %v1435_v1, %v1849_v22  ;;  %v792_v2 = vpop.f32.mrb[31].mxu0  ;;  %1460 = vmatprep.mubr.bf16.mxu1 %v844_v44  ;;  %v818_v3 = vmax.f32 %v798_v21, 0.0 }
 0x2c3   : > { %v816_v41 = vmax.f32 %v790_v36, 0.0  ;;  %v793_v48 = vadd.f32 %v1849_v22, %v792_v2  ;;  %1461 = vmatmul.mubr.bf16.gmra.mrb[24].mxu1 %v845_v35 }
 0x2c4   : > { %v819_v5 = vmax.f32 %v801_v47, 0.0  ;;  %1512 = vmatpush3.bf16.msra.mxu1 %v2005_v27  ;;  %v2129_v27 = vsel %vm2015_vm2, %v818_v3, %v1979_v23  ;;  %v1543_v23 = vld [vmem:[%s2262_s6 + $0x38] sm:$0xff]  }
 0x2c5   : > { %v817_v26 = vmax.f32 %v793_v48, 0.0  ;;  %v2117_v9 = vsel %vm2015_vm2, %v816_v41, %v1965_v45  ;;  %v1541_v45 = vld [vmem:[%s2262_s6 + $0x28] sm:$0xff]  }
 0x2c6   : > { %v2112_v4 = vsel %vm2015_vm2, %v819_v5, %v1959_v13  ;;  %1478 = vmatprep.subr.bf16.mxu0 %v1541_v45  ;;  %1505 = vmatprep.subr.bf16.mxu1 %v1541_v45 }
 0x2c7   : > { %v2122_v14 = vsel %vm2015_vm2, %v817_v26, %v1971_v0  ;;  %v847_v13 = vpack.c.bf16 %v2112_v4, %v2129_v27  ;;  %1479 = vmatpush3.bf16.msra.mxu0 %v1541_v45  ;;  %v1542_v0 = vld [vmem:[%s2262_s6 + $0x30] sm:$0xff]  }
 0x2c8   : > { %v846_v59 = vpack.c.bf16 %v2122_v14, %v2117_v9  ;;  %1513 = vmatpush3.bf16.msra.mxu1 %v1541_v45  ;;  %1480 = vmatprep.subr.bf16.mxu0 %v1542_v0 }
 0x2c9   : > { %1506 = vmatprep.subr.bf16.mxu1 %v1542_v0 }
 0x2ca   : > { %1464 = vmatprep.mubr.bf16.mxu1 %v846_v59 }
 0x2cb   : > { %1465 = vmatmul.mubr.bf16.gmra.mrb[28].mxu1 %v847_v13  ;;  %1481 = vmatpush3.bf16.msra.mxu0 %v1542_v0 }
 0x2cc   : > { %1514 = vmatpush3.bf16.msra.mxu1 %v1542_v0  ;;  %1482 = vmatprep.subr.bf16.mxu0 %v1543_v23 }
 0x2cd   : > { %1507 = vmatprep.subr.bf16.mxu1 %v1543_v23 }
 0x2cf   : > { %1483 = vmatpush3.bf16.msra.mxu0 %v1543_v23 }
 0x2d0   : > { %1515 = vmatpush3.bf16.msra.mxu1 %v1543_v23 }
 0x386   : > { %v1454_v15 = vpop.f32.mrb[16].mxu1 }
 0x387   : > { %v891_v61 = vadd.f32 %v1454_v15, %v1849_v22  ;;  %v882_v17 = vpop.f32.mrb[17].mxu1 }
 0x388   : > { %v883_v57 = vadd.f32 %v1849_v22, %v882_v17  ;;  %v1455_v30 = vpop.f32.mrb[18].mxu1 }
 0x389   : > { %v947_v31 = vmax.f32 %v891_v61, 0.0  ;;  %v894_v63 = vadd.f32 %v1455_v30, %v1849_v22  ;;  %v885_v32 = vpop.f32.mrb[19].mxu1 }
 0x38a   : > { %v945_v42 = vmax.f32 %v883_v57, 0.0  ;;  %v886_v33 = vadd.f32 %v1849_v22, %v885_v32 }
 0x38b   : > { %v948_v34 = vmax.f32 %v894_v63, 0.0  ;;  %v967_v10 = vsel %vm2146_vm3, %v947_v31, %v2037_v58 }
 0x38c   : > { %v946_v37 = vmax.f32 %v886_v33, 0.0  ;;  %v965_v18 = vsel %vm2146_vm3, %v945_v42, %v2027_v60 }
 0x38d   : > { %v968_v8 = vsel %vm2146_vm3, %v948_v34, %v2022_v56 }
 0x38e   : > { %v982_v12 = vpack.c.bf16 %v968_v8, %v967_v10  ;;  %v1458_v40 = vpop.f32.mrb[20].mxu1  ;;  %v966_v43 = vsel %vm2146_vm3, %v946_v37, %v2032_v29 }
 0x38f   : > { %v907_v50 = vadd.f32 %v1458_v40, %v1849_v22  ;;  %v898_v20 = vpop.f32.mrb[21].mxu1  ;;  %v981_v51 = vpack.c.bf16 %v966_v43, %v965_v18 }
 0x390   : > { %v899_v58 = vadd.f32 %v1849_v22, %v898_v20  ;;  %v1459_v6 = vpop.f32.mrb[22].mxu1 }
 0x391   : > { %v951_v54 = vmax.f32 %v907_v50, 0.0  ;;  %v910_v56 = vadd.f32 %v1459_v6, %v1849_v22  ;;  %v901_v39 = vpop.f32.mrb[23].mxu1  ;;  %1484 = vmatprep.mubr.bf16.mxu0 %v981_v51 }
 0x392   : > { %v949_v53 = vmax.f32 %v899_v58, 0.0  ;;  %v902_v19 = vadd.f32 %v1849_v22, %v901_v39  ;;  %1485 = vmatmul.mubr.bf16.vlgmr.msra.gmra.mrb[32].mxu0 %v982_v12 }
 0x393   : > { %v952_v60 = vmax.f32 %v910_v56, 0.0  ;;  %v971_v29 = vsel %vm2146_vm3, %v951_v54, %v2068_v16 }
 0x394   : > { %v950_v25 = vmax.f32 %v902_v19, 0.0  ;;  %v969_v44 = vsel %vm2146_vm3, %v949_v53, %v2055_v11 }
 0x395   : > { %v972_v21 = vsel %vm2146_vm3, %v952_v60, %v2050_v7 }
 0x396   : > { %v1462_v46 = vpop.f32.mrb[24].mxu1  ;;  %v970_v36 = vsel %vm2146_vm3, %v950_v25, %v2060_v38  ;;  %v984_v1 = vpack.c.bf16 %v972_v21, %v971_v29 }
 0x397   : > { %v923_v35 = vadd.f32 %v1462_v46, %v1849_v22  ;;  %v914_v47 = vpop.f32.mrb[25].mxu1  ;;  %v983_v2 = vpack.c.bf16 %v970_v36, %v969_v44 }
 0x398   : > { %v915_v16 = vadd.f32 %v1849_v22, %v914_v47  ;;  %v1463_v41 = vpop.f32.mrb[26].mxu1 }
 0x399   : > { %v955_v48 = vmax.f32 %v923_v35, 0.0  ;;  %v926_v7 = vadd.f32 %v1463_v41, %v1849_v22  ;;  %v917_v3 = vpop.f32.mrb[27].mxu1  ;;  %1488 = vmatprep.mubr.bf16.mxu0 %v983_v2 }
 0x39a   : > { %v953_v5 = vmax.f32 %v915_v16, 0.0  ;;  %v918_v11 = vadd.f32 %v1849_v22, %v917_v3  ;;  %1489 = vmatmul.mubr.bf16.gmra.mrb[36].mxu0 %v984_v1 }
 0x39b   : > { %v956_v26 = vmax.f32 %v926_v7, 0.0  ;;  %v975_v38 = vsel %vm2146_vm3, %v955_v48, %v2099_v62 }
 0x39c   : > { %v954_v59 = vmax.f32 %v918_v11, 0.0  ;;  %v973_v0 = vsel %vm2146_vm3, %v953_v5, %v2086_v28 }
 0x39d   : > { %v976_v13 = vsel %vm2146_vm3, %v956_v26, %v2081_v24 }
 0x39e   : > { %v1466_v45 = vpop.f32.mrb[28].mxu1  ;;  %v974_v23 = vsel %vm2146_vm3, %v954_v59, %v2091_v49  ;;  %v986_v15 = vpack.c.bf16 %v976_v13, %v975_v38 }
 0x39f   : > { %v939_v61 = vadd.f32 %v1466_v45, %v1849_v22  ;;  %v930_v52 = vpop.f32.mrb[29].mxu1  ;;  %v985_v17 = vpack.c.bf16 %v974_v23, %v973_v0 }
 0x3a0   : > { %v931_v62 = vadd.f32 %v1849_v22, %v930_v52  ;;  %v1467_v57 = vpop.f32.mrb[30].mxu1 }
 0x3a1   : > { %v959_v30 = vmax.f32 %v939_v61, 0.0  ;;  %v942_v24 = vadd.f32 %v1467_v57, %v1849_v22  ;;  %v933_v31 = vpop.f32.mrb[31].mxu1  ;;  %1492 = vmatprep.mubr.bf16.mxu0 %v985_v17 }
 0x3a2   : > { %v957_v63 = vmax.f32 %v931_v62, 0.0  ;;  %v934_v28 = vadd.f32 %v1849_v22, %v933_v31  ;;  %1493 = vmatmul.mubr.bf16.gmra.mrb[40].mxu0 %v986_v15 }
 0x3a3   : > { %v960_v32 = vmax.f32 %v942_v24, 0.0  ;;  %v979_v42 = vsel %vm2146_vm3, %v959_v30, %v2129_v27  ;;  %v1261_v27 = vld [vmem:[%s2263_s7] ss:$0 sm:$0xff] }
 0x3a4   : > { %v958_v49 = vmax.f32 %v934_v28, 0.0  ;;  %v977_v37 = vsel %vm2146_vm3, %v957_v63, %v2117_v9 }
 0x3a5   : > { %v980_v33 = vsel %vm2146_vm3, %v960_v32, %v2112_v4 }
 0x3a6   : > { %v988_v34 = vpack.c.bf16 %v980_v33, %v979_v42  ;;  %v978_v22 = vsel %vm2146_vm3, %v958_v49, %v2122_v14 }
 0x3a7   : > { %v987_v10 = vpack.c.bf16 %v978_v22, %v977_v37 }
 0x3a9   : > { %1496 = vmatprep.mubr.bf16.mxu1 %v987_v10 }
 0x3aa   : > { %1497 = vmatmul.mubr.bf16.vlgmr.msra.gmra.mrb[32].mxu1 %v988_v34 }
 0x465   : > { %v1486_v4 = vpop.f32.mrb[32].mxu0 }
 0x466   : > { %v1103_v9 = vadd.f32 %v1486_v4, %v1261_v27  ;;  %v1094_v14 = vpop.f32.mrb[33].mxu0 }
 0x467   : > { %v1095_v55 = vadd.f32 %v1261_v27, %v1094_v14  ;;  %v1487_v8 = vpop.f32.mrb[34].mxu0 }
 0x468   : > { %1160 = vst.msk [vmem:[%s2219_s25 + $0x10] sm:$0xff] %vm1157_vm4, %v1103_v9  ;;  %v1106_v12 = vadd.f32 %v1487_v8, %v1261_v27  ;;  %v1097_v40 = vpop.f32.mrb[35].mxu0 }
 0x469   : > { %1158 = vst.msk [vmem:[%s2219_s25] sm:$0xff] %vm1157_vm4, %v1095_v55  ;;  %v1098_v18 = vadd.f32 %v1261_v27, %v1097_v40 }
 0x46a   : > { %1161 = vst.msk [vmem:[%s2219_s25 + $0x18] sm:$0xff] %vm1157_vm4, %v1106_v12 }
 0x46b   : > { %1159 = vst.msk [vmem:[%s2219_s25 + $0x8] sm:$0xff] %vm1157_vm4, %v1098_v18 }
 0x46d   : > { %v1490_v43 = vpop.f32.mrb[36].mxu0 }
 0x46e   : > { %v1119_v50 = vadd.f32 %v1490_v43, %v1261_v27  ;;  %v1110_v20 = vpop.f32.mrb[37].mxu0 }
 0x46f   : > { %v1111_v51 = vadd.f32 %v1261_v27, %v1110_v20  ;;  %v1491_v58 = vpop.f32.mrb[38].mxu0 }
 0x470   : > { %1164 = vst.msk [vmem:[%s2219_s25 + $0x30] sm:$0xff] %vm1157_vm4, %v1119_v50  ;;  %v1122_v6 = vadd.f32 %v1491_v58, %v1261_v27  ;;  %v1113_v54 = vpop.f32.mrb[39].mxu0 }
 0x471   : > { %1162 = vst.msk [vmem:[%s2219_s25 + $0x20] sm:$0xff] %vm1157_vm4, %v1111_v51  ;;  %v1114_v56 = vadd.f32 %v1261_v27, %v1113_v54 }
 0x472   : > { %1165 = vst.msk [vmem:[%s2219_s25 + $0x38] sm:$0xff] %vm1157_vm4, %v1122_v6 }
 0x473   : > { %1163 = vst.msk [vmem:[%s2219_s25 + $0x28] sm:$0xff] %vm1157_vm4, %v1114_v56 }
 0x475   : > { %v1494_v39 = vpop.f32.mrb[40].mxu0 }
 0x476   : > { %v1135_v53 = vadd.f32 %v1494_v39, %v1261_v27  ;;  %v1126_v19 = vpop.f32.mrb[41].mxu0 }
 0x477   : > { %v1127_v60 = vadd.f32 %v1261_v27, %v1126_v19  ;;  %v1495_v25 = vpop.f32.mrb[42].mxu0 }
 0x478   : > { %1168 = vst.msk [vmem:[%s2219_s25 + $0x50] sm:$0xff] %vm1157_vm4, %v1135_v53  ;;  %v1138_v29 = vadd.f32 %v1495_v25, %v1261_v27  ;;  %v1129_v21 = vpop.f32.mrb[43].mxu0 }
 0x479   : > { %1166 = vst.msk [vmem:[%s2219_s25 + $0x40] sm:$0xff] %vm1157_vm4, %v1127_v60  ;;  %v1130_v46 = vadd.f32 %v1261_v27, %v1129_v21 }
 0x47a   : > { %1169 = vst.msk [vmem:[%s2219_s25 + $0x58] sm:$0xff] %vm1157_vm4, %v1138_v29 }
 0x47b   : > { %1167 = vst.msk [vmem:[%s2219_s25 + $0x48] sm:$0xff] %vm1157_vm4, %v1130_v46 }
 0x47d   : > { %v1498_v44 = vpop.f32.mrb[32].mxu1 }
 0x47e   : > { %v1151_v36 = vadd.f32 %v1498_v44, %v1261_v27  ;;  %v1142_v1 = vpop.f32.mrb[33].mxu1 }
 0x47f   : > { %v1143_v35 = vadd.f32 %v1261_v27, %v1142_v1  ;;  %v1499_v47 = vpop.f32.mrb[34].mxu1 }
 0x480   : > { %1172 = vst.msk [vmem:[%s2219_s25 + $0x70] sm:$0xff] %vm1157_vm4, %v1151_v36  ;;  %v1154_v2 = vadd.f32 %v1499_v47, %v1261_v27  ;;  %v1145_v16 = vpop.f32.mrb[35].mxu1 }
 0x481   : > { %1170 = vst.msk [vmem:[%s2219_s25 + $0x60] sm:$0xff] %vm1157_vm4, %v1143_v35  ;;  %v1146_v41 = vadd.f32 %v1261_v27, %v1145_v16 }
 0x482   : > { %1173 = vst.msk [vmem:[%s2219_s25 + $0x78] sm:$0xff] %vm1157_vm4, %v1154_v2 }
 0x483   : > { %1171 = vst.msk [vmem:[%s2219_s25 + $0x68] sm:$0xff] %vm1157_vm4, %v1146_v41 }
 0x484 PF: > { %s19_s29 = sadd.s32 1, %s1550_s29  }
 0x485   : > { %p16_p7 = scmp.ge.s32.totalorder %s19_s29, 4  }
 0x487   :  { %18 = sbr.rel (!%p16_p7) target bundleno = 2 (0x2), region = 78 }

</bundles_post_ra>
